<compile_context>
chip_gen: v5e
topology: v5e:2x2
jax: 0.10.0
libtpu: 0.0.40
codegen_flags: <defaults>
</compile_context>

<pallas_src>
import numpy as np
import jax
import jax.numpy as jnp
from jax.experimental import pallas as pl
from jax.experimental.pallas import tpu as pltpu


LANE = 128
SUBLANE = 8
_TARGET_TILE_BYTES = 2 * 1024 * 1024  # ~2 MiB per x tile -> ~8 MiB double-buffered in+out


# ---------------------------------------------------------------------------
# Schedule construction (matches NoiseScheduler.__init__, beta_type='linear')
# ---------------------------------------------------------------------------
def make_schedule(steps: int = 40, beta_type: str = "linear", gamma: float = 0.5):
    if beta_type == "linear":
        beta = 1.0 / (1 * steps - np.arange(1, steps + 1) + 1)
        k_final = [1.0]
        b_final = [0.0]
        for i in range(steps):
            k_final.append(k_final[-1] * (1 - beta[i]))
            b_final.append((1 - beta[i]) * b_final[-1] + gamma * beta[i])
        k_final = k_final[1:]
        b_final = b_final[1:]
    else:
        # TODO(synk): 'clip_linear', 'cos', 'sigmoid' branches are pure host-side numpy
        # schedule setup (no kernel work); only 'linear' is wired up here.
        raise NotImplementedError(beta_type)

    k_final = np.hstack([1, k_final]).astype(np.float32)  # (steps+1,)
    b_final = np.hstack([0, b_final]).astype(np.float32)  # (steps+1,)
    beta = np.hstack([0, beta]).astype(np.float32)        # (steps+1,)
    cumbeta = np.cumprod(beta).astype(np.float32)
    return k_final, b_final, beta, cumbeta


# ---------------------------------------------------------------------------
# Pallas kernel: out = k_rows * x + b_rows   (per-row affine, broadcast FMA)
# ---------------------------------------------------------------------------
def _affine_kernel(k_ref, b_ref, x_ref, o_ref):
    # k_ref / b_ref: (TB, 1) f32; x_ref / o_ref: (TB, TILE_N) lane-dense tiles.
    o_ref[...] = (k_ref[...] * x_ref[...] + b_ref[...]).astype(o_ref.dtype)


def _round_up(a: int, b: int) -> int:
    return ((a + b - 1) // b) * b


def noise_scheduler_forward(x, t, k_final, b_final):
    """x: (B, ...) float, t: (B,) int. Returns k_final[t]*x + b_final[t] (per-batch affine)."""
    orig_shape = x.shape
    B = orig_shape[0]
    N = int(np.prod(orig_shape[1:]))

    # Bounds safety: OOB SMEM/VMEM reads on TPU are unchecked and return garbage.
    t = jnp.clip(t.astype(jnp.int32), 0, k_final.shape[0] - 1)

    # Pre-gather per-row scale/shift outside the kernel (trivial XLA gather).
    k_rows = k_final[t].astype(jnp.float32).reshape(B, 1)
    b_rows = b_final[t].astype(jnp.float32).reshape(B, 1)

    # Lane-dense 2D view of the activations.
    x2 = x.reshape(B, N)

    # Tile selection: TB batch rows per block, TILE_N lanes (multiple of 128),
    # keeping each x block at ~2 MiB (safe on v5e/v6e/v7x VMEM budgets).
    itemsize = jnp.dtype(x.dtype).itemsize
    tb = B if B <= SUBLANE else SUBLANE
    max_row_elems = max(LANE, _TARGET_TILE_BYTES // (itemsize * tb))
    tile_n = min(_round_up(N, LANE), (max_row_elems // LANE) * LANE)

    b_pad = _round_up(B, tb)
    n_pad = _round_up(N, tile_n)
    if b_pad != B or n_pad != N:
        x2 = jnp.pad(x2, ((0, b_pad - B), (0, n_pad - N)))
        k_rows = jnp.pad(k_rows, ((0, b_pad - B), (0, 0)))
        b_rows = jnp.pad(b_rows, ((0, b_pad - B), (0, 0)))

    grid = (b_pad // tb, n_pad // tile_n)

    out = pl.pallas_call(
        _affine_kernel,
        out_shape=jax.ShapeDtypeStruct((b_pad, n_pad), x.dtype),
        grid=grid,
        in_specs=[
            pl.BlockSpec((tb, 1), lambda i, j: (i, 0)),        # k_rows
            pl.BlockSpec((tb, 1), lambda i, j: (i, 0)),        # b_rows
            pl.BlockSpec((tb, tile_n), lambda i, j: (i, j)),   # x
        ],
        out_specs=pl.BlockSpec((tb, tile_n), lambda i, j: (i, j)),
        compiler_params=pltpu.CompilerParams(
            dimension_semantics=("parallel", "parallel"),
        ),
    )(k_rows, b_rows, x2)

    if b_pad != B or n_pad != N:
        out = out[:B, :N]
    return out.reshape(orig_shape)


# ---------------------------------------------------------------------------
# Pure-JAX reference (mirrors the PyTorch forward + collect_batch intent)
# ---------------------------------------------------------------------------
def reference_forward(x, t, k_final, b_final):
    k = k_final[t].reshape(-1, *([1] * (x.ndim - 1)))
    b = b_final[t].reshape(-1, *([1] * (x.ndim - 1)))
    return k * x + b


if __name__ == "__main__":
    steps, gamma = 40, 0.5
    k_final_np, b_final_np, beta_np, cumbeta_np = make_schedule(steps, "linear", gamma)

    k_final = jnp.asarray(k_final_np)
    b_final = jnp.asarray(b_final_np)

    key = jax.random.PRNGKey(0)
    kx, kt, kx2, kt2 = jax.random.split(key, 4)

    # Primary test: small NCHW shape consistent with the module.
    B, C, H, W = 2, 4, 16, 16
    x = jax.random.uniform(kx, (B, C, H, W), dtype=jnp.float32)
    t = jax.random.randint(kt, (B,), 1, steps + 1, dtype=jnp.int32)

    out = noise_scheduler_forward(x, t, k_final, b_final)
    out = jax.block_until_ready(out)
    ref = reference_forward(x, t, k_final, b_final)
    np.testing.assert_allclose(np.asarray(out), np.asarray(ref), rtol=1e-6, atol=1e-6)

    # Secondary test: awkward shape exercising the lane/row padding path.
    B2, C2, H2, W2 = 3, 3, 5, 7
    x2 = jax.random.uniform(kx2, (B2, C2, H2, W2), dtype=jnp.float32)
    t2 = jax.random.randint(kt2, (B2,), 1, steps + 1, dtype=jnp.int32)
    out2 = jax.block_until_ready(noise_scheduler_forward(x2, t2, k_final, b_final))
    ref2 = reference_forward(x2, t2, k_final, b_final)
    np.testing.assert_allclose(np.asarray(out2), np.asarray(ref2), rtol=1e-6, atol=1e-6)

    print("KERNEL_OK")
</pallas_src>

<mosaic_0001>
module attributes {stable_mosaic.version = 11 : i64} {
  func.func @_affine_kernel(%arg0: i32, %arg1: i32, %arg2: memref<2x1xf32, #tpu.memory_space<vmem>>, %arg3: memref<2x1xf32, #tpu.memory_space<vmem>>, %arg4: memref<2x1024xf32, #tpu.memory_space<vmem>>, %arg5: memref<2x1024xf32, #tpu.memory_space<vmem>>) attributes {dimension_semantics = [#tpu.dimension_semantics<parallel>, #tpu.dimension_semantics<parallel>], iteration_bounds = array<i64: 1, 1>, scalar_prefetch = 0 : i64, scratch_operands = 0 : i64, tpu.core_type = #tpu.core_type<tc>, window_params = [{transform_indices = @transform_0, window_bounds = array<i64: 2, 1>}, {transform_indices = @transform_1, window_bounds = array<i64: 2, 1>}, {transform_indices = @transform_2, window_bounds = array<i64: 2, 1024>}, {transform_indices = @transform_3, window_bounds = array<i64: 2, 1024>}]} {
    %c0 = arith.constant 0 : index
    %c0_0 = arith.constant 0 : index
    %0 = vector.load %arg2[%c0, %c0_0] : memref<2x1xf32, #tpu.memory_space<vmem>>, vector<2x1xf32>
    %c0_1 = arith.constant 0 : index
    %c0_2 = arith.constant 0 : index
    %1 = vector.load %arg4[%c0_1, %c0_2] : memref<2x1024xf32, #tpu.memory_space<vmem>>, vector<2x1024xf32>
    %2 = vector.broadcast %0 : vector<2x1xf32> to vector<2x1024xf32>
    %3 = arith.mulf %2, %1 : vector<2x1024xf32>
    %c0_3 = arith.constant 0 : index
    %c0_4 = arith.constant 0 : index
    %4 = vector.load %arg3[%c0_3, %c0_4] : memref<2x1xf32, #tpu.memory_space<vmem>>, vector<2x1xf32>
    %5 = vector.broadcast %4 : vector<2x1xf32> to vector<2x1024xf32>
    %6 = arith.addf %3, %5 : vector<2x1024xf32>
    %c0_5 = arith.constant 0 : index
    %c0_6 = arith.constant 0 : index
    %7 = vector.load %arg5[%c0_5, %c0_6] : memref<2x1024xf32, #tpu.memory_space<vmem>>, vector<2x1024xf32>
    tpu.vector_store %arg5[%c0_5, %c0_6], %6 {strides = array<i32>} : memref<2x1024xf32, #tpu.memory_space<vmem>>, vector<2x1024xf32>,
    return
  }
  func.func @transform_0(%arg0: i32, %arg1: i32) -> (i32, i32) {
    %c0_i32 = arith.constant 0 : i32
    %c0_i32_0 = arith.constant 0 : i32
    return %arg0, %c0_i32 : i32, i32
  }
  func.func @transform_1(%arg0: i32, %arg1: i32) -> (i32, i32) {
    %c0_i32 = arith.constant 0 : i32
    %c0_i32_0 = arith.constant 0 : i32
    return %arg0, %c0_i32 : i32, i32
  }
  func.func @transform_2(%arg0: i32, %arg1: i32) -> (i32, i32) {
    %c0_i32 = arith.constant 0 : i32
    return %arg0, %arg1 : i32, i32
  }
  func.func @transform_3(%arg0: i32, %arg1: i32) -> (i32, i32) {
    %c0_i32 = arith.constant 0 : i32
    return %arg0, %arg1 : i32, i32
  }
}

</mosaic_0001>

<bundles_post_ra>
// kernel: tpu_custom_call.1
= control target key start
LH: loop header
LB: loop body
LE: loop exit
PB: predicated region body
PF: predicated region fallthrough
CT: control target
= control target key end

     0   :  { %8 = vsyncpa [#allocation3], 0  ;;  %s221_s0 = inlined_call_operand.vmem [shape: f32[2,1], index: 0, kind: input, shape index: {}]   ;;  %s222_s1 = inlined_call_operand.vmem [shape: f32[2,1], index: 1, kind: input, shape index: {}]   ;;  %s223_s2 = inlined_call_operand.hbm [shape: f32[2,1024], index: 2, kind: input, shape index: {}]   ;;  %s224_s3 = inlined_call_operand.hbm [shape: f32[2,1024], index: 3, kind: output, shape index: {}]  }
   0x1   :  { %9 = vsyncpa [#allocation4], 0  ;;  %s19_s14 = sshll.u32 %s223_s2, 4  ;;  %s180_s15 = smov [#allocation2]   ;;  %s20_s14 = int_to_ptr.hbm [resolvable:$true] %s19_s14 }
   0x2   :  { %s21_s16 = sshll.u32 %s180_s15, 4  ;;  %s22_s16 = int_to_ptr.vmem [resolvable:$true] %s21_s16 }
   0x3   :  { %24 = dma.hbm_to_vmem [thread:$0]  %s20_s14, 256, %s22_s16, [#allocation3]  }
   0x4   :  { %176 = dma.done.wait [#allocation3], 256  }
   0x5   :  { %177 = vsyncadd [#allocation3], 4294967040  ;;  %v181_v0 = vmov 0   ;;  %v29_v1 = vld [vmem:[%s221_s0] sm:$0x3]  ;;  %v30_v3 = vld [vmem:[#allocation2] sm:$0xff] }
   0x6   :  { %127 = vset.pattern.permute.xlu0 %v181_v0  ;;  %v66_v2 = vld [vmem:[%s222_s1] sm:$0x3]  ;;  %v31_v4 = vld [vmem:[#allocation2 + $0x8] sm:$0xff]  ;;  %39 = vst [vmem:[#allocation1] ss:$4 sm:$0xff] %v30_v3  ;;  %vm94_vm0 = vcmask 1041408  }
   0x7   :  { %34 = vperm.xlu0 %127, %v29_v1   ;;  %41 = vst [vmem:[#allocation1 + $0x20] ss:$4 sm:$0xff] %v31_v4  ;;  %vm96_vm1 = vcmask 1045508   ;;  %vm98_vm2 = vcmask 1043456   ;;  %s182_s0 = smov [#allocation5]   ;;  %s114_s22 = sshll.u32 %s224_s3, 4  ;;  %s115_s22 = int_to_ptr.hbm [resolvable:$true] %s114_s22 }
   0x8   :  { %s112_s1 = sshll.u32 %s182_s0, 4  ;;  %s113_s1 = int_to_ptr.vmem [resolvable:$true] %s112_s1 }
   0xd   :  { %v43_v6 = vld.sshfl [vmem:[#allocation1 + $0x8] sm:$0xff pattern:$0x73625140]  ;;  %v44_v7 = vld.sshfl [vmem:[#allocation1 + $0x10] sm:$0xff pattern:$0x73625140] }
   0xe   :  { %v45_v8 = vld.sshfl [vmem:[#allocation1 + $0x18] sm:$0xff pattern:$0x73625140]  ;;  %v47_v9 = vld.sshfl [vmem:[#allocation1 + $0x28] sm:$0xff pattern:$0x73625140] }
   0xf   :  { %69 = vperm.xlu0 %127, %v66_v2   ;;  %v48_v10 = vld.sshfl [vmem:[#allocation1 + $0x30] sm:$0xff pattern:$0x73625140]  ;;  %v49_v11 = vld.sshfl [vmem:[#allocation1 + $0x38] sm:$0xff pattern:$0x73625140] }
  0x10   :  { %v42_v12 = vld.sshfl [vmem:[#allocation1] sm:$0xff pattern:$0x73625140] }
  0x11   :  { %v46_v13 = vld.sshfl [vmem:[#allocation1 + $0x20] sm:$0xff pattern:$0x73625140] }
  0x79   :  { %v35_v5 = vpop.permute.xlu0 %34 }
  0x7a   :  { %v59_v14 = vmul.f32 %v43_v6, %v35_v5  ;;  %v60_v15 = vmul.f32 %v44_v7, %v35_v5  ;;  %v61_v16 = vmul.f32 %v45_v8, %v35_v5  ;;  %v63_v18 = vmul.f32 %v47_v9, %v35_v5 }
  0x7b   :  { %v64_v19 = vmul.f32 %v48_v10, %v35_v5  ;;  %v65_v20 = vmul.f32 %v49_v11, %v35_v5  ;;  %v58_v21 = vmul.f32 %v42_v12, %v35_v5  ;;  %v62_v25 = vmul.f32 %v46_v13, %v35_v5 }
  0x81   :  { %v70_v17 = vpop.permute.xlu0 %69 }
  0x82   :  { %v73_v22 = vadd.f32 %v70_v17, %v59_v14  ;;  %v74_v23 = vadd.f32 %v70_v17, %v60_v15  ;;  %v75_v24 = vadd.f32 %v70_v17, %v61_v16  ;;  %v77_v26 = vadd.f32 %v70_v17, %v63_v18 }
  0x83   :  { %v78_v27 = vadd.f32 %v70_v17, %v64_v19  ;;  %v79_v28 = vadd.f32 %v70_v17, %v65_v20  ;;  %v72_v29 = vadd.f32 %v70_v17, %v58_v21  ;;  %v76_v33 = vadd.f32 %v70_v17, %v62_v25 }
  0x84   :  { %v88_v30 = vrot.slane %v73_v22, 6  ;;  %v89_v31 = vrot.slane %v74_v23, 4  ;;  %v90_v32 = vrot.slane %v75_v24, 2  ;;  %v91_v34 = vrot.slane %v77_v26, 6 }
  0x85   :  { %v92_v35 = vrot.slane %v78_v27, 4  ;;  %v93_v36 = vrot.slane %v79_v28, 2 }
  0x86   :  { %v95_v37 = vsel %vm94_vm0, %v72_v29, %v88_v30  ;;  %v97_v38 = vsel %vm96_vm1, %v89_v31, %v90_v32  ;;  %v100_v40 = vsel %vm94_vm0, %v76_v33, %v91_v34 }
  0x87   :  { %v99_v39 = vsel %vm98_vm2, %v95_v37, %v97_v38  ;;  %v101_v41 = vsel %vm96_vm1, %v92_v35, %v93_v36 }
  0x88   :  { %v102_v42 = vsel %vm98_vm2, %v100_v40, %v101_v41  ;;  %105 = vst [vmem:[#allocation5] sm:$0xff] %v99_v39 }
  0x89   :  { %106 = vst [vmem:[#allocation5 + $0x8] sm:$0xff] %v102_v42 }
  0x8a   :  { %117 = dma.vmem_to_hbm [thread:$0]  %s113_s1, 256, %s115_s22, [#allocation4]  }
  0x8b   :  { %178 = dma.done.wait [#allocation4], 256  }
  0x8c   :  { %179 = vsyncadd [#allocation4], 4294967040 }
  0x8d   :  { %122 = vsyncpa [#allocation3], 1 }
  0x8e   :  { %123 = vsyncpa [#allocation4], 1 }

</bundles_post_ra>
